<compile_context>
chip_gen: v7x
topology: tpu7x:2x2x1
jax: 0.10.0
libtpu: 0.0.40
codegen_flags: <defaults>
</compile_context>

<pallas_src>
import functools

import jax
import jax.numpy as jnp
from jax.experimental import pallas as pl
from jax.experimental.pallas import tpu as pltpu

# ----------------------------- config (args.*) ------------------------------
HIDDEN_SIZE = 32         # args.hidden_size
LAYER_N = 2              # args.layer_N
USE_FEATURE_NORM = True  # args.use_feature_normalization

STATE_DIM = 20
N_AGENTS = 3
ACT_DIM = 4
ACT_TOTAL = N_AGENTS * ACT_DIM
INPUT_DIM = STATE_DIM + ACT_TOTAL   # 32

BATCH = 16
LN_EPS = 1e-5            # torch.nn.LayerNorm default


# --------------------------- packed-slab layout ------------------------------
# One f32 slab of shape (rows, W), W = max(D, H):
#   row 0             : LayerNorm gamma     (lanes [:D])
#   row 1             : LayerNorm beta      (lanes [:D])
#   row 2             : fc1 bias b1         (lanes [:H])
#   row 3             : out weight W_out^T  (lanes [:H])
#   row 4             : out bias b_out      (lane 0)
#   rows 5..4+L       : hidden biases bh[i] (lanes [:H])
#   <pad to 8-row (sublane) boundary>
#   rows R1..R1+D-1   : fc1 weight W1       (D, H)
#   rows R1+D..       : hidden weights Wh[i](L*H, H)
def _small_rows(layer_n: int) -> int:
    return ((5 + layer_n + 7) // 8) * 8


def pack_params(params, hidden: int, layer_n: int):
    """Repack module-style params into the fused slab.

    Call ONCE per parameter update (outside the jitted per-step forward) so the
    concat/pad/transpose ops never run on the hot path.
    """
    gamma, beta, w1, b1, wh, bh, wo, bo = params
    d = w1.shape[0]
    w = max(d, hidden)

    def row(v):
        v = jnp.asarray(v, jnp.float32).reshape(1, -1)
        return jnp.pad(v, ((0, 0), (0, w - v.shape[-1])))

    small = [row(gamma), row(beta), row(b1), row(wo.T), row(bo)]
    small += [row(bh[i]) for i in range(layer_n)]
    small = jnp.concatenate(small, axis=0)                      # (5+L, W)
    small = jnp.pad(small, ((0, _small_rows(layer_n) - small.shape[0]), (0, 0)))
    w1p = jnp.pad(jnp.asarray(w1, jnp.float32), ((0, 0), (0, w - hidden)))
    whp = jnp.pad(jnp.asarray(wh, jnp.float32).reshape(layer_n * hidden, hidden),
                  ((0, 0), (0, w - hidden)))
    return jnp.concatenate([small, w1p, whp], axis=0)           # (rows, W)


# ------------------------------- kernel body --------------------------------
def critic_kernel(x_ref, p_ref, q_ref, *, d, h, layer_n, row_w1, row_wh,
                  use_feature_norm):
    x = x_ref[...].astype(jnp.float32)                          # [B, D]

    if use_feature_norm:
        # LayerNorm over the feature axis (f32 end-to-end; valid on v5e).
        mean = jnp.mean(x, axis=-1, keepdims=True)
        xc = x - mean
        var = jnp.mean(xc * xc, axis=-1, keepdims=True)
        x = xc * jax.lax.rsqrt(var + LN_EPS)
        x = x * p_ref[0:1, :d] + p_ref[1:2, :d]                 # affine LN

    # fc1 + relu: single K=D matmul, bf16 MXU operands, f32 accumulation.
    w1 = p_ref[row_w1:row_w1 + d, :h]
    acc = jnp.dot(x.astype(jnp.bfloat16), w1.astype(jnp.bfloat16),
                  preferred_element_type=jnp.float32)
    acc = jnp.maximum(acc + p_ref[2:3, :h], 0.0)

    # layer2[i] + relu (static unroll over layer_N).
    for i in range(layer_n):
        wi = p_ref[row_wh + i * h:row_wh + (i + 1) * h, :h]
        acc = jnp.dot(acc.astype(jnp.bfloat16), wi.astype(jnp.bfloat16),
                      preferred_element_type=jnp.float32)
        acc = jnp.maximum(acc + p_ref[5 + i:6 + i, :h], 0.0)

    # out projection: VPU mul + lane reduce (no transpose, no M=1 MXU op).
    wo_row = p_ref[3:4, :h]                                     # [1, H] = W_out^T
    bo = p_ref[4:5, 0:1]                                        # [1, 1]
    q = jnp.sum(acc * wo_row, axis=-1, keepdims=True) + bo      # [B, 1]
    q_ref[...] = q.astype(q_ref.dtype)


# --------------------------------- wrapper -----------------------------------
def make_critic_forward(hidden=HIDDEN_SIZE, layer_n=LAYER_N,
                        use_feature_norm=USE_FEATURE_NORM):
    """Returns the jitted per-step forward: (state, actions, param_slab) -> q [B,1]."""

    @jax.jit
    def forward(state, actions, param_slab):
        b = state.shape[0]
        d = state.shape[-1] + actions.shape[-1]
        row_w1 = _small_rows(layer_n)
        row_wh = row_w1 + d

        # Wrapper-side concat: 2 KB HBM round trip, negligible; lets fc1 be a
        # single matmul and the kernel take exactly 2 operands.
        x = jnp.concatenate([state, actions], axis=-1).astype(jnp.float32)

        kernel = functools.partial(
            critic_kernel, d=d, h=hidden, layer_n=layer_n,
            row_w1=row_w1, row_wh=row_wh, use_feature_norm=use_feature_norm)

        flops = 2 * b * (d * hidden + layer_n * hidden * hidden + hidden) + 10 * b * d
        bytes_accessed = 4 * (b * d + param_slab.shape[0] * param_slab.shape[1] + b)

        return pl.pallas_call(
            kernel,
            out_shape=jax.ShapeDtypeStruct((b, 1), jnp.float32),
            in_specs=[pl.BlockSpec(memory_space=pltpu.MemorySpace.VMEM),
                      pl.BlockSpec(memory_space=pltpu.MemorySpace.VMEM)],
            out_specs=pl.BlockSpec(memory_space=pltpu.MemorySpace.VMEM),
            cost_estimate=pl.CostEstimate(flops=int(flops),
                                          transcendentals=int(b),
                                          bytes_accessed=int(bytes_accessed)),
        )(x, param_slab)

    return forward


# --------------------------- pure-JAX reference ------------------------------
def reference(state, actions, params):
    gamma, beta, w1, b1, wh, bh, wo, bo = params
    x = jnp.concatenate([state, actions], axis=-1)
    if USE_FEATURE_NORM:
        mean = jnp.mean(x, axis=-1, keepdims=True)
        var = jnp.mean((x - mean) ** 2, axis=-1, keepdims=True)
        x = (x - mean) / jnp.sqrt(var + LN_EPS)
        x = x * gamma + beta
    h = jax.nn.relu(x @ w1 + b1)
    for i in range(wh.shape[0]):
        h = jax.nn.relu(h @ wh[i] + bh[i])
    return h @ wo + bo


# ------------------------------ param init -----------------------------------
def make_params(key):
    # Deterministic synthetic init (shapes match the nn.Module's Linear layers,
    # stored transposed so the kernel computes x @ W + b).
    ks = jax.random.split(key, 6)
    D, H = INPUT_DIM, HIDDEN_SIZE
    gamma = jnp.ones((1, D), jnp.float32)
    beta = jnp.zeros((1, D), jnp.float32)
    w1 = jax.random.normal(ks[0], (D, H), jnp.float32) * 0.1
    b1 = jnp.zeros((1, H), jnp.float32)
    wh = jax.random.normal(ks[1], (LAYER_N, H, H), jnp.float32) * 0.1
    bh = jnp.zeros((LAYER_N, 1, H), jnp.float32)
    wo = jax.random.normal(ks[2], (H, 1), jnp.float32) * 0.1
    bo = jnp.zeros((1, 1), jnp.float32)
    return gamma, beta, w1, b1, wh, bh, wo, bo


# ---------------------------------- main --------------------------------------
if __name__ == "__main__":
    key = jax.random.PRNGKey(0)
    k_state, k_act, k_params = jax.random.split(key, 3)

    state = jax.random.normal(k_state, (BATCH, STATE_DIM), jnp.float32)
    actions = jax.random.normal(k_act, (BATCH, ACT_TOTAL), jnp.float32)
    params = make_params(k_params)

    # Pack ONCE, outside the per-step path (re-run only when params change).
    param_slab = jax.block_until_ready(pack_params(params, HIDDEN_SIZE, LAYER_N))

    forward = make_critic_forward()
    q = forward(state, actions, param_slab)
    q = jax.block_until_ready(q)

    q_ref = reference(state, actions, params)
    assert q.shape == (BATCH, 1), q.shape
    # Tolerance covers bf16 MXU operands (f32 accumulation); structural errors
    # would be O(1), so this still validates the forward-pass semantics.
    assert jnp.allclose(q, q_ref, atol=2e-2, rtol=2e-2), (
        f"mismatch: max abs err = {jnp.max(jnp.abs(q - q_ref))}")

    print("KERNEL_OK")
</pallas_src>

<mosaic_0001>
module attributes {stable_mosaic.version = 11 : i64} {
  func.func @critic_kernel(%arg0: memref<16x32xf32, #tpu.memory_space<vmem>>, %arg1: memref<104x32xf32, #tpu.memory_space<vmem>>, %arg2: memref<16x1xf32, #tpu.memory_space<vmem>>) attributes {dimension_semantics = [], scalar_prefetch = 0 : i64, scratch_operands = 0 : i64, tpu.core_type = #tpu.core_type<tc>} {
    %c0 = arith.constant 0 : index
    %c0_0 = arith.constant 0 : index
    %0 = vector.load %arg0[%c0, %c0_0] : memref<16x32xf32, #tpu.memory_space<vmem>>, vector<16x32xf32>
    %cst = arith.constant dense<0.000000e+00> : vector<16xf32>
    %1 = vector.multi_reduction <add>, %0, %cst [1] : vector<16x32xf32> to vector<16xf32>
    %2 = vector.shape_cast %1 : vector<16xf32> to vector<16x1xf32>
    %cst_1 = arith.constant 3.200000e+01 : f32
    %3 = vector.broadcast %cst_1 : f32 to vector<16x1xf32>
    %4 = arith.divf %2, %3 : vector<16x1xf32>
    %5 = vector.broadcast %4 : vector<16x1xf32> to vector<16x32xf32>
    %6 = arith.subf %0, %5 : vector<16x32xf32>
    %7 = arith.mulf %6, %6 : vector<16x32xf32>
    %cst_2 = arith.constant dense<0.000000e+00> : vector<16xf32>
    %8 = vector.multi_reduction <add>, %7, %cst_2 [1] : vector<16x32xf32> to vector<16xf32>
    %9 = vector.shape_cast %8 : vector<16xf32> to vector<16x1xf32>
    %cst_3 = arith.constant 3.200000e+01 : f32
    %10 = vector.broadcast %cst_3 : f32 to vector<16x1xf32>
    %11 = arith.divf %9, %10 : vector<16x1xf32>
    %cst_4 = arith.constant 9.99999974E-6 : f32
    %12 = vector.broadcast %cst_4 : f32 to vector<16x1xf32>
    %13 = arith.addf %11, %12 : vector<16x1xf32>
    %14 = math.rsqrt %13 : vector<16x1xf32>
    %15 = vector.broadcast %14 : vector<16x1xf32> to vector<16x32xf32>
    %16 = arith.mulf %6, %15 : vector<16x32xf32>
    %c0_5 = arith.constant 0 : index
    %c0_6 = arith.constant 0 : index
    %17 = vector.load %arg1[%c0_5, %c0_6] : memref<104x32xf32, #tpu.memory_space<vmem>>, vector<1x32xf32>
    %18 = vector.broadcast %17 : vector<1x32xf32> to vector<16x32xf32>
    %19 = arith.mulf %16, %18 : vector<16x32xf32>
    %c1 = arith.constant 1 : index
    %c0_7 = arith.constant 0 : index
    %20 = vector.load %arg1[%c1, %c0_7] : memref<104x32xf32, #tpu.memory_space<vmem>>, vector<1x32xf32>
    %21 = vector.broadcast %20 : vector<1x32xf32> to vector<16x32xf32>
    %22 = arith.addf %19, %21 : vector<16x32xf32>
    %c8 = arith.constant 8 : index
    %c0_8 = arith.constant 0 : index
    %23 = vector.load %arg1[%c8, %c0_8] : memref<104x32xf32, #tpu.memory_space<vmem>>, vector<32x32xf32>
    %24 = arith.truncf %22 : vector<16x32xf32> to vector<16x32xbf16>
    %25 = arith.truncf %23 : vector<32x32xf32> to vector<32x32xbf16>
    %cst_9 = arith.constant dense<0.000000e+00> : vector<16x32xf32>
    %26 = tpu.matmul %24, %25, %cst_9 {dimension_numbers = #tpu.dot_dimension_numbers<[1], [0], [0], [1], [0, 0, 1, 1], [], []>} : vector<16x32xbf16>, vector<32x32xbf16>, vector<16x32xf32> -> vector<16x32xf32>
    %c2 = arith.constant 2 : index
    %c0_10 = arith.constant 0 : index
    %27 = vector.load %arg1[%c2, %c0_10] : memref<104x32xf32, #tpu.memory_space<vmem>>, vector<1x32xf32>
    %28 = vector.broadcast %27 : vector<1x32xf32> to vector<16x32xf32>
    %29 = arith.addf %26, %28 : vector<16x32xf32>
    %cst_11 = arith.constant 0.000000e+00 : f32
    %30 = vector.broadcast %cst_11 : f32 to vector<16x32xf32>
    %31 = arith.maximumf %29, %30 : vector<16x32xf32>
    %c40 = arith.constant 40 : index
    %c0_12 = arith.constant 0 : index
    %32 = vector.load %arg1[%c40, %c0_12] : memref<104x32xf32, #tpu.memory_space<vmem>>, vector<32x32xf32>
    %33 = arith.truncf %31 : vector<16x32xf32> to vector<16x32xbf16>
    %34 = arith.truncf %32 : vector<32x32xf32> to vector<32x32xbf16>
    %cst_13 = arith.constant dense<0.000000e+00> : vector<16x32xf32>
    %35 = tpu.matmul %33, %34, %cst_13 {dimension_numbers = #tpu.dot_dimension_numbers<[1], [0], [0], [1], [0, 0, 1, 1], [], []>} : vector<16x32xbf16>, vector<32x32xbf16>, vector<16x32xf32> -> vector<16x32xf32>
    %c5 = arith.constant 5 : index
    %c0_14 = arith.constant 0 : index
    %36 = vector.load %arg1[%c5, %c0_14] : memref<104x32xf32, #tpu.memory_space<vmem>>, vector<1x32xf32>
    %37 = vector.broadcast %36 : vector<1x32xf32> to vector<16x32xf32>
    %38 = arith.addf %35, %37 : vector<16x32xf32>
    %cst_15 = arith.constant 0.000000e+00 : f32
    %39 = vector.broadcast %cst_15 : f32 to vector<16x32xf32>
    %40 = arith.maximumf %38, %39 : vector<16x32xf32>
    %c72 = arith.constant 72 : index
    %c0_16 = arith.constant 0 : index
    %41 = vector.load %arg1[%c72, %c0_16] : memref<104x32xf32, #tpu.memory_space<vmem>>, vector<32x32xf32>
    %42 = arith.truncf %40 : vector<16x32xf32> to vector<16x32xbf16>
    %43 = arith.truncf %41 : vector<32x32xf32> to vector<32x32xbf16>
    %cst_17 = arith.constant dense<0.000000e+00> : vector<16x32xf32>
    %44 = tpu.matmul %42, %43, %cst_17 {dimension_numbers = #tpu.dot_dimension_numbers<[1], [0], [0], [1], [0, 0, 1, 1], [], []>} : vector<16x32xbf16>, vector<32x32xbf16>, vector<16x32xf32> -> vector<16x32xf32>
    %c6 = arith.constant 6 : index
    %c0_18 = arith.constant 0 : index
    %45 = vector.load %arg1[%c6, %c0_18] : memref<104x32xf32, #tpu.memory_space<vmem>>, vector<1x32xf32>
    %46 = vector.broadcast %45 : vector<1x32xf32> to vector<16x32xf32>
    %47 = arith.addf %44, %46 : vector<16x32xf32>
    %cst_19 = arith.constant 0.000000e+00 : f32
    %48 = vector.broadcast %cst_19 : f32 to vector<16x32xf32>
    %49 = arith.maximumf %47, %48 : vector<16x32xf32>
    %c3 = arith.constant 3 : index
    %c0_20 = arith.constant 0 : index
    %50 = vector.load %arg1[%c3, %c0_20] : memref<104x32xf32, #tpu.memory_space<vmem>>, vector<1x32xf32>
    %c4 = arith.constant 4 : index
    %c0_21 = arith.constant 0 : index
    %51 = vector.load %arg1[%c4, %c0_21] : memref<104x32xf32, #tpu.memory_space<vmem>>, vector<1x1xf32>
    %52 = vector.broadcast %50 : vector<1x32xf32> to vector<16x32xf32>
    %53 = arith.mulf %49, %52 : vector<16x32xf32>
    %cst_22 = arith.constant dense<0.000000e+00> : vector<16xf32>
    %54 = vector.multi_reduction <add>, %53, %cst_22 [1] : vector<16x32xf32> to vector<16xf32>
    %55 = vector.shape_cast %54 : vector<16xf32> to vector<16x1xf32>
    %56 = vector.broadcast %51 : vector<1x1xf32> to vector<16x1xf32>
    %57 = arith.addf %55, %56 : vector<16x1xf32>
    %c0_23 = arith.constant 0 : index
    %c0_24 = arith.constant 0 : index
    %58 = vector.load %arg2[%c0_23, %c0_24] : memref<16x1xf32, #tpu.memory_space<vmem>>, vector<16x1xf32>
    tpu.vector_store %arg2[%c0_23, %c0_24], %57 {strides = array<i32>} : memref<16x1xf32, #tpu.memory_space<vmem>>, vector<16x1xf32>,
    return
  }
}

</mosaic_0001>

<bundles_post_ra>
// kernel: forward.1
= control target key start
LH: loop header
LB: loop body
LE: loop exit
PB: predicated region body
PF: predicated region fallthrough
CT: control target
= control target key end

     0   :  { %vm14_vm0 = vcmask 261120   ;;  %v306_v17 = vmov 0.0   ;;  %vm307_vm1 = vmmov 0   ;;  %vm250_vm2 = vcmask 7168   ;;  %s404_s0 = inlined_call_operand.vmem [shape: f32[16,32], index: 0, kind: input, shape index: {}]   ;;  %s405_s1 = inlined_call_operand.vmem [shape: f32[104,32], index: 1, kind: input, shape index: {}]   ;;  %s406_s2 = inlined_call_operand.vmem [shape: f32[16,1], index: 2, kind: output, shape index: {}]  }
   0x1   :  { %v12_v0 = vld [vmem:[%s404_s0] sm:$0xff]  ;;  %v13_v1 = vld [vmem:[%s404_s0 + $0x8] sm:$0xff]  ;;  %v57_v15 = vld [vmem:[%s405_s1 + $0x10] sm:$0xff]  ;;  %276 = vmatprep.subr.bf16.mxu0 %v306_v17  ;;  %284 = vmatprep.subr.bf16.mxu1 %v306_v17 }
   0x2   :  { %v15_v2 = vsel %vm14_vm0, %v12_v0, 0.0  ;;  %v18_v3 = vsel %vm14_vm0, %v13_v1, 0.0  ;;  %v56_v14 = vld [vmem:[%s405_s1 + $0x8] sm:$0xff]  ;;  %v58_v18 = vld [vmem:[%s405_s1 + $0x18] sm:$0xff]  ;;  %v59_v19 = vld [vmem:[%s405_s1 + $0x20] sm:$0xff]  ;;  %280 = vmatprep.mubr.msk.bf16.mxu0 %vm307_vm1, %v306_v17  ;;  %288 = vmatprep.mubr.msk.bf16.mxu1 %vm307_vm1, %v306_v17 }
   0x3   :  { %16 = vadd.xlane.f32.xlu0 %v15_v2  ;;  %v61_v16 = vpack.c.bf16 %v57_v15, %v56_v14  ;;  %v62_v20 = vpack.c.bf16 %v59_v19, %v58_v18  ;;  %v257_v29 = vld [vmem:[%s405_s1] ss:$0 sm:$0xff]  ;;  %v258_v33 = vld [vmem:[%s405_s1 + $0x1] ss:$0 sm:$0xff]  ;;  %v114_v38 = vld [vmem:[%s405_s1 + $0x28] sm:$0xff] }
   0x4   :  { %v115_v39 = vld [vmem:[%s405_s1 + $0x30] sm:$0xff]  ;;  %v116_v41 = vld [vmem:[%s405_s1 + $0x38] sm:$0xff]  ;;  %v117_v42 = vld [vmem:[%s405_s1 + $0x40] sm:$0xff] }
   0x5   :  { %277 = vmatpush3.bf16.msra.mxu0 %v61_v16  ;;  %v119_v40 = vpack.c.bf16 %v115_v39, %v114_v38  ;;  %v120_v43 = vpack.c.bf16 %v117_v42, %v116_v41  ;;  %v259_v44 = vld [vmem:[%s405_s1 + $0x2] ss:$0 sm:$0xff]  ;;  %v172_v54 = vld [vmem:[%s405_s1 + $0x48] sm:$0xff]  ;;  %v173_v55 = vld [vmem:[%s405_s1 + $0x50] sm:$0xff] }
   0x6   :  { %278 = vmatprep.subr.bf16.mxu0 %v306_v17  ;;  %v177_v56 = vpack.c.bf16 %v173_v55, %v172_v54  ;;  %v174_v57 = vld [vmem:[%s405_s1 + $0x58] sm:$0xff]  ;;  %v175_v58 = vld [vmem:[%s405_s1 + $0x60] sm:$0xff] }
   0x7   :  { %19 = vadd.xlane.f32.xlu0 %v18_v3  ;;  %285 = vmatpush3.bf16.msra.mxu1 %v119_v40  ;;  %v178_v59 = vpack.c.bf16 %v175_v58, %v174_v57  ;;  %v261_v60 = vld [vmem:[%s405_s1 + $0x5] ss:$0 sm:$0xff] }
   0x8   :  { %286 = vmatprep.subr.bf16.mxu1 %v306_v17 }
   0x9   :  { %279 = vmatpush3.bf16.msra.mxu0 %v62_v20  ;;  %v266_v20 = vld [vmem:[%s405_s1 + $0x4] ss:$0 sm:$0xff] }
   0xa   :  { %292 = vmatprep.subr.bf16.mxu0 %v306_v17 }
   0xb   :  { %287 = vmatpush3.bf16.msra.mxu1 %v120_v43 }
  0x90   :  { %v17_v4 = vpop.xlane.xlu0 %16 }
  0x91   :  { %v22_v5 = vmul.f32 0.03125, %v17_v4 }
  0x93   :  { %v24_v6 = vsub.f32 %v12_v0, %v22_v5 }
  0x94   :  { %v20_v7 = vpop.xlane.xlu0 %19 }
  0x95   :  { %v23_v8 = vmul.f32 0.03125, %v20_v7  ;;  %v26_v9 = vmul.f32 %v24_v6, %v24_v6 }
  0x97   :  { %v25_v10 = vsub.f32 %v13_v1, %v23_v8  ;;  %v28_v11 = vsel %vm14_vm0, %v26_v9, 0.0 }
  0x98   :  { %29 = vadd.xlane.f32.xlu1 %v28_v11  ;;  %v265_v11 = vld [vmem:[%s405_s1 + $0x3] ss:$0 sm:$0xff] }
  0x99   :  { %v27_v12 = vmul.f32 %v25_v10, %v25_v10 }
  0x9b   :  { %v31_v13 = vsel %vm14_vm0, %v27_v12, 0.0 }
  0x9c   :  { %32 = vadd.xlane.f32.xlu1 %v31_v13 }
 0x125   :  { %v30_v21 = vpop.xlane.xlu1 %29 }
 0x126   :  { %v34_v22 = vmul.f32 0.03125, %v30_v21 }
 0x128   :  { %v36_v23 = vadd.f32 1e-05, %v34_v22 }
 0x129   :  { %v33_v24 = vpop.xlane.xlu1 %32 }
 0x12a   :  { %302 = vrsqrt.f32 %v36_v23  ;;  %v35_v25 = vmul.f32 0.03125, %v33_v24 }
 0x12c   :  { %v37_v26 = vadd.f32 1e-05, %v35_v25 }
 0x12e   :  { %304 = vrsqrt.f32 %v37_v26 }
 0x134   :  { %v303_v27 = vpop.eup %302 }
 0x135   :  { %v40_v28 = vmul.f32 %v303_v27, %v24_v6  ;;  %v263_v6 = vld [vmem:[%s405_s1 + $0x6] ss:$0 sm:$0xff] }
 0x137   :  { %v47_v32 = vmul.f32 %v257_v29, %v40_v28 }
 0x138   :  { %v305_v30 = vpop.eup %304 }
 0x139   :  { %v41_v31 = vmul.f32 %v305_v30, %v25_v10  ;;  %v54_v35 = vadd.f32 %v258_v33, %v47_v32 }
 0x13b   :  { %v48_v34 = vmul.f32 %v257_v29, %v41_v31 }
 0x13d   :  { %v55_v36 = vadd.f32 %v258_v33, %v48_v34 }
 0x13f   :  { %v60_v37 = vpack.c.bf16 %v55_v36, %v54_v35 }
 0x141   :  { %281 = vmatmul.mubr.msk.bf16.vlgmr.msra.gmra.mrb[0].mxu0 %vm14_vm0, %v60_v37 }
 0x142   :  { %296 = vmatprep.mubr.msk.bf16.mxu0 %vm307_vm1, %v306_v17  ;;  %293 = vmatpush3.bf16.msra.mxu0 %v177_v56 }
 0x143   :  { %294 = vmatprep.subr.bf16.mxu0 %v306_v17 }
 0x146   :  { %295 = vmatpush3.bf16.msra.mxu0 %v178_v59 }
 0x214   :  { %v105_v45 = vpop.f32.mrb[0].mxu0 }
 0x215   :  { %v106_v46 = vadd.f32 %v259_v44, %v105_v45  ;;  %v282_v47 = vpop.f32.mrb[1].mxu0 }
 0x216   :  { %v108_v48 = vpop.f32.mrb[2].mxu0 }
 0x217   :  { %v109_v49 = vadd.f32 %v259_v44, %v108_v48  ;;  %v283_v50 = vpop.f32.mrb[3].mxu0  ;;  %v112_v51 = vmax.f32 %v106_v46, 0.0 }
 0x219   :  { %v113_v52 = vmax.f32 %v109_v49, 0.0 }
 0x21b   :  { %v118_v53 = vpack.c.bf16 %v113_v52, %v112_v51 }
 0x21d   :  { %289 = vmatmul.mubr.msk.bf16.vlgmr.msra.gmra.mrb[0].mxu1 %vm14_vm0, %v118_v53 }
 0x2f0   :  { %v163_v61 = vpop.f32.mrb[0].mxu1 }
 0x2f1   :  { %v164_v62 = vadd.f32 %v261_v60, %v163_v61  ;;  %v290_v63 = vpop.f32.mrb[1].mxu1 }
 0x2f2   :  { %v166_v0 = vpop.f32.mrb[2].mxu1 }
 0x2f3   :  { %v167_v1 = vadd.f32 %v261_v60, %v166_v0  ;;  %v291_v2 = vpop.f32.mrb[3].mxu1  ;;  %v170_v3 = vmax.f32 %v164_v62, 0.0 }
 0x2f5   :  { %v171_v4 = vmax.f32 %v167_v1, 0.0 }
 0x2f7   :  { %v176_v5 = vpack.c.bf16 %v171_v4, %v170_v3 }
 0x2f9   :  { %297 = vmatmul.mubr.msk.bf16.vlgmr.msra.gmra.mrb[4].mxu0 %vm14_vm0, %v176_v5 }
 0x3cc   :  { %v221_v7 = vpop.f32.mrb[4].mxu0 }
 0x3cd   :  { %v222_v8 = vadd.f32 %v263_v6, %v221_v7  ;;  %v298_v9 = vpop.f32.mrb[5].mxu0 }
 0x3ce   :  { %v224_v10 = vpop.f32.mrb[6].mxu0 }
 0x3cf   :  { %v228_v12 = vmax.f32 %v222_v8, 0.0  ;;  %v225_v13 = vadd.f32 %v263_v6, %v224_v10  ;;  %v299_v14 = vpop.f32.mrb[7].mxu0 }
 0x3d1   :  { %v229_v15 = vmax.f32 %v225_v13, 0.0  ;;  %v236_v16 = vmul.f32 %v265_v11, %v228_v12 }
 0x3d3   :  { %v238_v17 = vsel %vm14_vm0, %v236_v16, 0.0  ;;  %v237_v18 = vmul.f32 %v265_v11, %v229_v15 }
 0x3d4   :  { %239 = vadd.xlane.f32.xlu0 %v238_v17 }
 0x3d5   :  { %v241_v19 = vsel %vm14_vm0, %v237_v18, 0.0 }
 0x3d6   :  { %242 = vadd.xlane.f32.xlu1 %v241_v19 }
 0x461   :  { %v240_v21 = vpop.xlane.xlu0 %239 }
 0x462   :  { %v248_v22 = vadd.f32 %v266_v20, %v240_v21 }
 0x463   :  { %v243_v23 = vpop.xlane.xlu1 %242 }
 0x464   :  { %251 = vst.msk [vmem:[%s406_s2] sm:$0xff] %vm250_vm2, %v248_v22  ;;  %v249_v24 = vadd.f32 %v266_v20, %v243_v23 }
 0x466   :  { %252 = vst.msk [vmem:[%s406_s2 + $0x8] sm:$0xff] %vm250_vm2, %v249_v24 }

</bundles_post_ra>
